<compile_context>
chip_gen: v5e
topology: v5e:2x2
jax: 0.10.0
libtpu: 0.0.40
codegen_flags: <defaults>
</compile_context>

<pallas_src>
import functools

import jax
import jax.numpy as jnp
from jax import lax
from jax.experimental import pallas as pl
from jax.experimental.pallas import tpu as pltpu

K = 3
SCALE = 0.9999997615814209


def _convt_mask_kernel(x_ref, w_ref, b_ref, o_ref, *, H, W, padw):
    # x_ref: (Bt, Cin, H*W)   batch tile, NCHW flattened over (H, W)
    # w_ref: (Cout, K*K*Cin)  im2col weights of the equivalent SAME conv
    # b_ref: (Cout, 1)        bias
    # o_ref: (Bt, Cout, H*W)  output, lane-dense over H*W
    bt, cin, hw = x_ref.shape

    # Column masks for the kw = 0 / K-1 taps (row wrap in the flattened index
    # space); the kh = 0 / K-1 boundary is handled by the zero pads below.
    col = lax.broadcasted_iota(jnp.int32, (cin, hw), 1)
    if W & (W - 1) == 0:            # power of two -> single AND, no modulo
        col = col & (W - 1)
    else:
        col = col % W
    mask_l = col != 0
    mask_r = col != (W - 1)
    zero = jnp.zeros((cin, hw), jnp.float32)
    zpad = jnp.zeros((cin, padw), jnp.float32)      # lane-aligned zero pads

    per_image = []
    for b in range(bt):
        xflat = x_ref[b]                                      # (Cin, H*W)
        buf = jnp.concatenate([zpad, xflat, zpad], axis=1)    # (Cin, 2*padw+H*W)
        taps = []
        for kh in range(K):
            for kw in range(K):
                d = (kh - 1) * W + (kw - 1)                   # flat tap shift
                t = lax.slice(buf, (0, padw + d), (cin, padw + d + hw))
                if kw == 0:
                    t = jnp.where(mask_l, t, zero)
                elif kw == K - 1:
                    t = jnp.where(mask_r, t, zero)
                taps.append(t)
        per_image.append(jnp.concatenate(taps, axis=0))       # (K*K*Cin, H*W)

    # Lane-concat the batch tile so one matmul covers all Bt*HW lanes.
    patches = per_image[0] if bt == 1 else jnp.concatenate(per_image, axis=1)

    # Single im2col matmul: (Cout, 72) x (72, Bt*H*W), lane-dense N axis.
    acc = jnp.dot(w_ref[...], patches, preferred_element_type=jnp.float32)
    acc = acc + b_ref[...]                                     # (Cout, 1) bcast

    # v1 * (1 - (v1 > 0)) * SCALE  ==  min(v1, 0) * SCALE
    out = (jnp.minimum(acc, 0.0) * jnp.float32(SCALE)).astype(o_ref.dtype)
    for b in range(bt):
        o_ref[b] = out[:, b * hw:(b + 1) * hw]


def prepare_params(w_pt, b_pt):
    """One-time repack of ConvTranspose2d params into im2col form.

    w_pt: (Cin, Cout, 3, 3)  PyTorch ConvTranspose2d weight layout
    b_pt: (Cout,)
    Returns (w_mat (Cout, 9*Cin), b_col (Cout, 1)).  Do this once at init so
    the pallas_call is the only op on the per-call hot path.
    """
    Cin, Cout = w_pt.shape[0], w_pt.shape[1]
    w_flip = jnp.flip(w_pt, axis=(2, 3)).astype(jnp.float32)
    w_mat = jnp.transpose(w_flip, (1, 2, 3, 0)).reshape(Cout, K * K * Cin)
    b_col = b_pt.reshape(Cout, 1).astype(jnp.float32)
    return w_mat, b_col


@functools.partial(jax.jit, static_argnames=("batch_tile",))
def conv_transpose_mask(x_nchw, w_mat, b_col, *, batch_tile=1):
    """Forward pass of the PyTorch Model with pre-packed weights.

    x_nchw: (N, Cin, H, W) float32
    w_mat:  (Cout, 9*Cin)  from prepare_params
    b_col:  (Cout, 1)      from prepare_params
    batch_tile: images per grid step (1 = batch-parallel grid for v7x's 2 TCs;
                N = single grid step, best on 1-TC v5e/v6e).
    Returns (N, Cout, H, W) float32.
    """
    N, Cin, H, W = x_nchw.shape
    Cout = w_mat.shape[0]
    HW = H * W
    assert N % batch_tile == 0
    assert w_mat.shape == (Cout, K * K * Cin)

    # Lane-aligned zero-pad width, >= W+1 so every tap window stays in-bounds.
    padw = ((W + 1 + 127) // 128) * 128

    # (N, Cin, H, W) -> (N, Cin, H*W): contiguous reshape, no data movement.
    x_flat = x_nchw.reshape(N, Cin, HW).astype(jnp.float32)

    kernel = functools.partial(_convt_mask_kernel, H=H, W=W, padw=padw)

    cost = pl.CostEstimate(
        flops=2 * N * Cout * HW * (K * K * Cin),
        transcendentals=0,
        bytes_accessed=4 * (x_flat.size + w_mat.size + b_col.size + N * Cout * HW),
    )

    out_flat = pl.pallas_call(
        kernel,
        out_shape=jax.ShapeDtypeStruct((N, Cout, HW), jnp.float32),
        grid_spec=pltpu.PrefetchScalarGridSpec(
            num_scalar_prefetch=0,
            grid=(N // batch_tile,),
            in_specs=[
                pl.BlockSpec((batch_tile, Cin, HW), lambda n: (n, 0, 0)),
                pl.BlockSpec((Cout, K * K * Cin), lambda n: (0, 0)),
                pl.BlockSpec((Cout, 1), lambda n: (0, 0)),
            ],
            out_specs=pl.BlockSpec((batch_tile, Cout, HW), lambda n: (n, 0, 0)),
        ),
        compiler_params=pltpu.CompilerParams(
            dimension_semantics=("parallel",)),
        cost_estimate=cost,
    )(x_flat, w_mat, b_col)

    # (N, Cout, H*W) -> (N, Cout, H, W): free reshape of contiguous minor dims.
    return out_flat.reshape(N, Cout, H, W)


def _reference(x_nchw, w_pt, b_pt):
    # Pure-JAX reference: flipped-kernel SAME conv + mask + scale.
    x_nhwc = jnp.transpose(x_nchw, (0, 2, 3, 1)).astype(jnp.float32)
    w_hwio = jnp.transpose(jnp.flip(w_pt, axis=(2, 3)), (2, 3, 0, 1)).astype(jnp.float32)
    v1 = lax.conv_general_dilated(
        x_nhwc, w_hwio, window_strides=(1, 1), padding="SAME",
        dimension_numbers=("NHWC", "HWIO", "NHWC")) + b_pt.reshape(1, 1, 1, -1)
    v4 = jnp.where(v1 > 0, 0.0, v1) * jnp.float32(SCALE)
    return jnp.transpose(v4, (0, 3, 1, 2))


if __name__ == "__main__":
    key = jax.random.PRNGKey(0)
    kx, kwt, kb = jax.random.split(key, 3)

    N, Cin, Cout, H, W = 2, 8, 32, 16, 16

    x = jax.random.normal(kx, (N, Cin, H, W), dtype=jnp.float32)

    # Deterministic ConvTranspose2d-style init: U(-b, b), b = 1/sqrt(Cin*K*K).
    bound = 1.0 / (Cin * K * K) ** 0.5
    w_pt = jax.random.uniform(kwt, (Cin, Cout, K, K), jnp.float32, -bound, bound)
    b_pt = jax.random.uniform(kb, (Cout,), jnp.float32, -bound, bound)

    # One-time (init-time) repack; not on the per-call hot path.
    w_mat, b_col = jax.block_until_ready(prepare_params(w_pt, b_pt))

    ref = jax.block_until_ready(_reference(x, w_pt, b_pt))

    # Default path: batch-parallel grid (one image per TensorCore on v7x).
    out = jax.block_until_ready(conv_transpose_mask(x, w_mat, b_col))
    assert out.shape == (N, Cout, H, W), out.shape
    assert jnp.allclose(out, ref, atol=1e-4, rtol=1e-4), "mismatch vs reference"

    # Single-grid-step path (best on 1-TC v5e/v6e): whole batch in one matmul.
    out1 = jax.block_until_ready(conv_transpose_mask(x, w_mat, b_col, batch_tile=N))
    assert jnp.allclose(out1, ref, atol=1e-4, rtol=1e-4), "mismatch (batch_tile=N)"

    print("KERNEL_OK")
</pallas_src>

<mosaic_0001>
module attributes {stable_mosaic.version = 11 : i64} {
  func.func @_convt_mask_kernel(%arg0: i32, %arg1: memref<1x8x256xf32, #tpu.memory_space<vmem>>, %arg2: memref<32x72xf32, #tpu.memory_space<vmem>>, %arg3: memref<32x1xf32, #tpu.memory_space<vmem>>, %arg4: memref<1x32x256xf32, #tpu.memory_space<vmem>>) attributes {dimension_semantics = [#tpu.dimension_semantics<parallel>], iteration_bounds = array<i64: 2>, scalar_prefetch = 0 : i64, scratch_operands = 0 : i64, tpu.core_type = #tpu.core_type<tc>, window_params = [{transform_indices = @transform_0, window_bounds = array<i64: 1, 8, 256>}, {pipeline_mode = #tpu.pipeline_mode<synchronous>, transform_indices = @transform_1, window_bounds = array<i64: 32, 72>}, {pipeline_mode = #tpu.pipeline_mode<synchronous>, transform_indices = @transform_2, window_bounds = array<i64: 32, 1>}, {transform_indices = @transform_3, window_bounds = array<i64: 1, 32, 256>}]} {
    %0 = tpu.iota {dimensions = array<i32: 1>} : vector<8x256xi32>
    %c15_i32 = arith.constant 15 : i32
    %1 = vector.broadcast %c15_i32 : i32 to vector<8x256xi32>
    %2 = arith.andi %0, %1 : vector<8x256xi32>
    %c0_i32 = arith.constant 0 : i32
    %3 = vector.broadcast %c0_i32 : i32 to vector<8x256xi32>
    %4 = arith.cmpi ne, %2, %3 : vector<8x256xi32>
    %c15_i32_0 = arith.constant 15 : i32
    %5 = vector.broadcast %c15_i32_0 : i32 to vector<8x256xi32>
    %6 = arith.cmpi ne, %2, %5 : vector<8x256xi32>
    %cst = arith.constant 0.000000e+00 : f32
    %7 = vector.broadcast %cst : f32 to vector<8x256xf32>
    %cst_1 = arith.constant 0.000000e+00 : f32
    %8 = vector.broadcast %cst_1 : f32 to vector<8x128xf32>
    %c0 = arith.constant 0 : index
    %c0_2 = arith.constant 0 : index
    %c0_3 = arith.constant 0 : index
    %9 = vector.load %arg1[%c0, %c0_2, %c0_3] : memref<1x8x256xf32, #tpu.memory_space<vmem>>, vector<1x8x256xf32>
    %10 = vector.shape_cast %9 : vector<1x8x256xf32> to vector<8x256xf32>
    %11 = tpu.concatenate %8, %10, %8 in 1 : vector<8x128xf32>, vector<8x256xf32>, vector<8x128xf32> -> vector<8x512xf32>
    %12 = vector.extract_strided_slice %11 {offsets = [0, 111], sizes = [8, 256], strides = [1, 1]} : vector<8x512xf32> to vector<8x256xf32>
    %13 = arith.select %4, %12, %7 : vector<8x256xi1>, vector<8x256xf32>
    %14 = vector.extract_strided_slice %11 {offsets = [0, 112], sizes = [8, 256], strides = [1, 1]} : vector<8x512xf32> to vector<8x256xf32>
    %15 = vector.extract_strided_slice %11 {offsets = [0, 113], sizes = [8, 256], strides = [1, 1]} : vector<8x512xf32> to vector<8x256xf32>
    %16 = arith.select %6, %15, %7 : vector<8x256xi1>, vector<8x256xf32>
    %17 = vector.extract_strided_slice %11 {offsets = [0, 127], sizes = [8, 256], strides = [1, 1]} : vector<8x512xf32> to vector<8x256xf32>
    %18 = arith.select %4, %17, %7 : vector<8x256xi1>, vector<8x256xf32>
    %19 = vector.extract_strided_slice %11 {offsets = [0, 128], sizes = [8, 256], strides = [1, 1]} : vector<8x512xf32> to vector<8x256xf32>
    %20 = vector.extract_strided_slice %11 {offsets = [0, 129], sizes = [8, 256], strides = [1, 1]} : vector<8x512xf32> to vector<8x256xf32>
    %21 = arith.select %6, %20, %7 : vector<8x256xi1>, vector<8x256xf32>
    %22 = vector.extract_strided_slice %11 {offsets = [0, 143], sizes = [8, 256], strides = [1, 1]} : vector<8x512xf32> to vector<8x256xf32>
    %23 = arith.select %4, %22, %7 : vector<8x256xi1>, vector<8x256xf32>
    %24 = vector.extract_strided_slice %11 {offsets = [0, 144], sizes = [8, 256], strides = [1, 1]} : vector<8x512xf32> to vector<8x256xf32>
    %25 = vector.extract_strided_slice %11 {offsets = [0, 145], sizes = [8, 256], strides = [1, 1]} : vector<8x512xf32> to vector<8x256xf32>
    %26 = arith.select %6, %25, %7 : vector<8x256xi1>, vector<8x256xf32>
    %27 = tpu.concatenate %13, %14, %16, %18, %19, %21, %23, %24, %26 in 0 : vector<8x256xf32>, vector<8x256xf32>, vector<8x256xf32>, vector<8x256xf32>, vector<8x256xf32>, vector<8x256xf32>, vector<8x256xf32>, vector<8x256xf32>, vector<8x256xf32> -> vector<72x256xf32>
    %c0_4 = arith.constant 0 : index
    %c0_5 = arith.constant 0 : index
    %28 = vector.load %arg2[%c0_4, %c0_5] : memref<32x72xf32, #tpu.memory_space<vmem>>, vector<32x72xf32>
    %cst_6 = arith.constant dense<0.000000e+00> : vector<32x256xf32>
    %29 = tpu.matmul %28, %27, %cst_6 {dimension_numbers = #tpu.dot_dimension_numbers<[1], [0], [0], [1], [0, 0, 1, 1], [], []>} : vector<32x72xf32>, vector<72x256xf32>, vector<32x256xf32> -> vector<32x256xf32>
    %c0_7 = arith.constant 0 : index
    %c0_8 = arith.constant 0 : index
    %30 = vector.load %arg3[%c0_7, %c0_8] : memref<32x1xf32, #tpu.memory_space<vmem>>, vector<32x1xf32>
    %31 = vector.broadcast %30 : vector<32x1xf32> to vector<32x256xf32>
    %32 = arith.addf %29, %31 : vector<32x256xf32>
    %cst_9 = arith.constant 0.000000e+00 : f32
    %33 = vector.broadcast %cst_9 : f32 to vector<32x256xf32>
    %34 = arith.minimumf %32, %33 : vector<32x256xf32>
    %cst_10 = arith.constant 0.999999761 : f32
    %35 = vector.broadcast %cst_10 : f32 to vector<32x256xf32>
    %36 = arith.mulf %34, %35 : vector<32x256xf32>
    %c0_11 = arith.constant 0 : index
    %c0_12 = arith.constant 0 : index
    %c0_13 = arith.constant 0 : index
    %37 = vector.load %arg4[%c0_11, %c0_12, %c0_13] : memref<1x32x256xf32, #tpu.memory_space<vmem>>, vector<1x32x256xf32>
    %38 = vector.shape_cast %37 : vector<1x32x256xf32> to vector<32x256xf32>
    %39 = vector.shape_cast %36 : vector<32x256xf32> to vector<1x32x256xf32>
    tpu.vector_store %arg4[%c0_11, %c0_12, %c0_13], %39 {strides = array<i32>} : memref<1x32x256xf32, #tpu.memory_space<vmem>>, vector<1x32x256xf32>,
    return
  }
  func.func @transform_0(%arg0: i32) -> (i32, i32, i32) {
    %c0_i32 = arith.constant 0 : i32
    %c0_i32_0 = arith.constant 0 : i32
    %c0_i32_1 = arith.constant 0 : i32
    return %arg0, %c0_i32, %c0_i32_0 : i32, i32, i32
  }
  func.func @transform_1(%arg0: i32) -> (i32, i32) {
    %c0_i32 = arith.constant 0 : i32
    %c0_i32_0 = arith.constant 0 : i32
    %c0_i32_1 = arith.constant 0 : i32
    return %c0_i32, %c0_i32_0 : i32, i32
  }
  func.func @transform_2(%arg0: i32) -> (i32, i32) {
    %c0_i32 = arith.constant 0 : i32
    %c0_i32_0 = arith.constant 0 : i32
    %c0_i32_1 = arith.constant 0 : i32
    return %c0_i32, %c0_i32_0 : i32, i32
  }
  func.func @transform_3(%arg0: i32) -> (i32, i32, i32) {
    %c0_i32 = arith.constant 0 : i32
    %c0_i32_0 = arith.constant 0 : i32
    %c0_i32_1 = arith.constant 0 : i32
    return %arg0, %c0_i32, %c0_i32_0 : i32, i32, i32
  }
}

</mosaic_0001>

<bundles_post_ra>
// kernel: conv_transpose_mask.1
= control target key start
LH: loop header
LB: loop body
LE: loop exit
PB: predicated region body
PF: predicated region fallthrough
CT: control target
= control target key end

     0   :  { %s583_s12 = smov 0   ;;  %s738_s0 = inlined_call_operand.vmem [shape: f32[2,8,256], index: 0, kind: input, shape index: {}]   ;;  %s739_s1 = inlined_call_operand.vmem [shape: f32[32,72], index: 1, kind: input, shape index: {}]   ;;  %s740_s2 = inlined_call_operand.vmem [shape: f32[32,1], index: 2, kind: input, shape index: {}]   ;;  %s741_s3 = inlined_call_operand.vmem [shape: f32[2,32,256], index: 3, kind: output, shape index: {}]  }
   0x1 LB: > { %s463_s13 = sadd.s32 4294967295, %s551_s12   ;;  %p467_p0 = scmp.ge.s32.totalorder %s551_s12, 1  ;;  %s551_s12 = sphi %s583_s12, %s13_s12  }
   0x2   : > { %p137_p1 = scmp.lt.s32.totalorder %s551_s12, 3 }
   0x4   : > { %p138_p2 = pnand %p467_p0, %p137_p1 }
   0x5   : > { %p161_p3 = scmp.lt.s32.totalorder (!%p138_p2), %s463_s13, 1  ;;  %s554_s14 = smov (!%p138_p2), 111  }
   0x6   : > { %141 = sbr.rel (%p138_p2) target bundleno = 335 (0x14f), region = 32  ;;  %s555_s15 = smov (!%p138_p2), 112  }
   0x7   : > { %s556_s20 = smov (!%p138_p2), 113   ;;  %s557_s21 = smov (!%p138_p2), 127  }
   0x8   : > { %s558_s22 = smov (!%p138_p2), 1   ;;  %s559_s23 = smov (!%p138_p2), 15  }
   0x9   : > { %s560_s24 = smov (!%p138_p2), 16   ;;  %s561_s25 = smov (!%p138_p2), 17  }
   0xb   : > { %v553_v0 = vmov 0.0   ;;  %s751_s13 = smov (!%p161_p3, %s463_s13), 1  ;;  %v171_v7 = vlaneseq  ;;  %vm256_vm0 = vcmask 908288   ;;  %vm280_vm3 = vcmask 916480   ;;  %v289_v44 = vld [vmem:[%s740_s2] sm:$0xff]  ;;  %v291_v45 = vld [vmem:[%s740_s2 + $0x10] sm:$0xff] }
   0xc   : > { %254 = vrot.lane.b32.xlu1 %v553_v0, %s554_s14  ;;  %278 = vrot.lane.b32.xlu2 %v553_v0, %s555_s15  ;;  %s494_s16 = sshll.u32 %s751_s13, 4  ;;  %vm243_vm4 = vcmask 924672   ;;  %vm230_vm7 = vcmask 1039360   ;;  %vm217_vm8 = vcmask 7168   ;;  %v562_v39 = vmov 0   ;;  %v290_v46 = vld [vmem:[%s740_s2 + $0x8] sm:$0xff] }
   0xd   : > { %s165_s19 = scalar_lea.vmem %s738_s0, %s494_s16  ;;  %v172_v9 = vand.u32 127, %v171_v7  ;;  %542 = vset.pattern.permute.xlu1 %v562_v39  ;;  %544 = vset.pattern.permute.xlu0 %v562_v39  ;;  %vm204_vm9 = vcmask 121856   ;;  %vm269_vm10 = vcmask 130048   ;;  %vm191_vm11 = vcmask 138240   ;;  %v292_v55 = vld [vmem:[%s740_s2 + $0x18] sm:$0xff]  ;;  %v287_v57 = vld [vmem:[%s739_s1 + $0x10] sm:$0xff] }
   0xe   : > { %v597_v1 = vld [vmem:[%s165_s19] sm:$0xff]  ;;  %v599_v2 = vld [vmem:[%s165_s19 + $0x8] sm:$0xff]  ;;  %543 = vset.pattern.permute.xlu2 %v562_v39  ;;  %vm313_vm12 = vcmask 588800   ;;  %v288_v61 = vld [vmem:[%s739_s1 + $0x18] sm:$0xff]  ;;  %s495_s17 = sshll.u32 %s751_s13, 6 }
   0xf   : > { %250 = vrot.lane.b32.xlu0 %v597_v1, %s554_s14  ;;  %v532_v3 = vpack.i.bf16 %v599_v2, %v597_v1  ;;  %v537_v4 = vpack.i.bf16 %v597_v1, %v553_v0  ;;  %v173_v11 = vadd.s32 128, %v172_v9  ;;  %v174_v14 = vand.u32 15, %v172_v9  ;;  %v285_v58 = vld [vmem:[%s739_s1] sm:$0xff]  ;;  %v286_v62 = vld [vmem:[%s739_s1 + $0x8] sm:$0xff] }
  0x11   : > { %v175_v15 = vand.u32 15, %v173_v11  ;;  %vm617_vm1 = vcmp.ne.s32.totalorder %v174_v14, 15  ;;  %vm633_vm5 = vcmp.ne.s32.totalorder %v174_v14, 0 }
  0x13   : > { %vm621_vm2 = vcmp.ne.s32.totalorder %v175_v15, 15  ;;  %vm637_vm6 = vcmp.ne.s32.totalorder %v175_v15, 0 }
  0x14   : > { %533 = vrot.lane.b32.xlu1 %v532_v3, %s555_s15  ;;  %237 = vrot.lane.b32.xlu2 %v597_v1, %s556_s20 }
  0x17   : > { %252 = vrot.lane.b32.xlu0 %v599_v2, %s554_s14 }
  0x1c   : > { %241 = vrot.lane.b32.xlu1 %v553_v0, %s556_s20  ;;  %224 = vrot.lane.b32.xlu2 %v597_v1, %s557_s21 }
  0x1f   : > { %239 = vrot.lane.b32.xlu0 %v599_v2, %s556_s20  ;;  %s725_s20 = scalar_lea.vmem %s741_s3, %s495_s17 }
  0x24   : > { %228 = vrot.lane.b32.xlu1 %v553_v0, %s557_s21  ;;  %211 = vrot.lane.b32.xlu2 %v553_v0, %s558_s22 }
  0x27   : > { %226 = vrot.lane.b32.xlu0 %v599_v2, %s557_s21 }
  0x2c   : > { %215 = vrot.lane.b32.xlu1 %v599_v2, %s558_s22  ;;  %198 = vrot.lane.b32.xlu2 %v553_v0, %s559_s23 }
  0x2f   : > { %213 = vrot.lane.b32.xlu0 %v597_v1, %s558_s22 }
  0x34   : > { %202 = vrot.lane.b32.xlu1 %v599_v2, %s559_s23  ;;  %538 = vrot.lane.b32.xlu2 %v537_v4, %s560_s24 }
  0x37   : > { %200 = vrot.lane.b32.xlu0 %v597_v1, %s559_s23 }
  0x3c   : > { %185 = vrot.lane.b32.xlu1 %v553_v0, %s561_s25  ;;  %187 = vrot.lane.b32.xlu2 %v597_v1, %s561_s25 }
  0x3f   : > { %267 = vrot.lane.b32.xlu0 %v599_v2, %s560_s24 }
  0x44   : > { %295 = vperm.xlu1 %542, %v289_v44   ;;  %300 = vperm.xlu2 %543, %v290_v46  }
  0x47   : > { %189 = vrot.lane.b32.xlu0 %v599_v2, %s561_s25 }
  0x4c   : > { %310 = vperm.xlu1 %542, %v292_v55  }
  0x4f   : > { %305 = vperm.xlu0 %544, %v291_v45  }
  0x66   : > { %v279_v5 = vpop.permute.xlu2 %278 }
  0x6e   : > { %v238_v6 = vpop.permute.xlu2 %237 }
  0x76   : > { %v225_v12 = vpop.permute.xlu2 %224 }
  0x7e   : > { %v255_v8 = vpop.permute.xlu1 %254  ;;  %v212_v25 = vpop.permute.xlu2 %211 }
  0x81   : > { %v251_v10 = vpop.permute.xlu0 %250 }
  0x86   : > { %v534_v13 = vpop.permute.xlu1 %533  ;;  %v199_v33 = vpop.permute.xlu2 %198 }
  0x87   : > { %v535_v16 = vunpack.i.l.bf16 %v534_v13  ;;  %v536_v17 = vunpack.i.h.bf16 %v534_v13 }
  0x89   : > { %v253_v19 = vpop.permute.xlu0 %252  ;;  %v281_v23 = vsel %vm280_vm3, %v535_v16, %v536_v17  ;;  %v282_v26 = vsel %vm280_vm3, %v536_v17, %v279_v5 }
  0x8a   : > { %v257_v21 = vsel %vm256_vm0, %v251_v10, %v253_v19  ;;  %v258_v22 = vsel %vm256_vm0, %v253_v19, %v255_v8 }
  0x8b   : > { %472 = vmatpush.msk.msra.mxu0 %vm617_vm1, %v257_v21  ;;  %496 = vmatpush.msk.msra.mxu2 %vm617_vm1, %v257_v21 }
  0x8c   : > { %482 = vmatpush.msk.msra.mxu1 %vm621_vm2, %v258_v22  ;;  %505 = vmatpush.msk.msra.mxu3 %vm621_vm2, %v258_v22 }
  0x8d   : > { %334 = vmatpush.msra.mxu0 %v281_v23  ;;  %497 = vmatpush.msra.mxu2 %v281_v23 }
  0x8e   : > { %v242_v24 = vpop.permute.xlu1 %241  ;;  %363 = vmatpush.msra.mxu1 %v282_v26  ;;  %506 = vmatpush.msra.mxu3 %v282_v26  ;;  %v539_v38 = vpop.permute.xlu2 %538 }
  0x8f   : > { %v541_v47 = vunpack.i.h.bf16 %v539_v38  ;;  %v540_v48 = vunpack.i.l.bf16 %v539_v38 }
  0x91   : > { %v240_v28 = vpop.permute.xlu0 %239  ;;  %v270_v53 = vsel %vm269_vm10, %v540_v48, %v541_v47 }
  0x92   : > { %v244_v30 = vsel %vm243_vm4, %v238_v6, %v240_v28  ;;  %v245_v31 = vsel %vm243_vm4, %v240_v28, %v242_v24 }
  0x93   : > { %473 = vmatpush.msk.msra.mxu0 %vm633_vm5, %v244_v30  ;;  %498 = vmatpush.msk.msra.mxu2 %vm633_vm5, %v244_v30 }
  0x94   : > { %483 = vmatpush.msk.msra.mxu1 %vm637_vm6, %v245_v31  ;;  %507 = vmatpush.msk.msra.mxu3 %vm637_vm6, %v245_v31 }
  0x96   : > { %v229_v32 = vpop.permute.xlu1 %228  ;;  %v188_v50 = vpop.permute.xlu2 %187 }
  0x99   : > { %v227_v34 = vpop.permute.xlu0 %226 }
  0x9a   : > { %v231_v35 = vsel %vm230_vm7, %v225_v12, %v227_v34  ;;  %v232_v36 = vsel %vm230_vm7, %v227_v34, %v229_v32 }
  0x9b   : > { %474 = vmatpush.msk.msra.mxu0 %vm617_vm1, %v231_v35  ;;  %499 = vmatpush.msk.msra.mxu2 %vm617_vm1, %v231_v35 }
  0x9c   : > { %484 = vmatpush.msk.msra.mxu1 %vm621_vm2, %v232_v36  ;;  %508 = vmatpush.msk.msra.mxu3 %vm621_vm2, %v232_v36 }
  0x9d   : > { %337 = vmatpush.msra.mxu0 %v597_v1  ;;  %500 = vmatpush.msra.mxu2 %v597_v1 }
  0x9e   : > { %v216_v37 = vpop.permute.xlu1 %215  ;;  %366 = vmatpush.msra.mxu1 %v599_v2  ;;  %509 = vmatpush.msra.mxu3 %v599_v2  ;;  %v301_v8 = vpop.permute.xlu2 %300 }
  0xa1   : > { %v214_v40 = vpop.permute.xlu0 %213 }
  0xa2   : > { %v218_v41 = vsel %vm217_vm8, %v212_v25, %v214_v40  ;;  %v219_v42 = vsel %vm217_vm8, %v214_v40, %v216_v37 }
  0xa3   : > { %475 = vmatpush.msk.msra.mxu0 %vm633_vm5, %v218_v41  ;;  %501 = vmatpush.msk.msra.mxu2 %vm633_vm5, %v218_v41 }
  0xa4   : > { %485 = vmatpush.msk.msra.mxu1 %vm637_vm6, %v219_v42  ;;  %510 = vmatpush.msk.msra.mxu3 %vm637_vm6, %v219_v42 }
  0xa6   : > { %v203_v43 = vpop.permute.xlu1 %202 }
  0xa9   : > { %v201_v49 = vpop.permute.xlu0 %200 }
  0xaa   : > { %v205_v51 = vsel %vm204_vm9, %v199_v33, %v201_v49  ;;  %v206_v52 = vsel %vm204_vm9, %v201_v49, %v203_v43 }
  0xab   : > { %476 = vmatpush.msk.msra.mxu0 %vm617_vm1, %v205_v51  ;;  %502 = vmatpush.msk.msra.mxu2 %vm617_vm1, %v205_v51 }
  0xac   : > { %486 = vmatpush.msk.msra.mxu1 %vm621_vm2, %v206_v52  ;;  %511 = vmatpush.msk.msra.mxu3 %vm621_vm2, %v206_v52 }
  0xad   : > { %503 = vmatpush.msra.mxu2 %v270_v53  ;;  %340 = vmatpush.msra.mxu0 %v270_v53 }
  0xae   : > { %v186_v54 = vpop.permute.xlu1 %185 }
  0xaf   : > { %v192_v56 = vsel %vm191_vm11, %v186_v54, %v188_v50 }
  0xb0   : > { %504 = vmatpush.msk.msra.mxu2 %vm633_vm5, %v192_v56  ;;  %477 = vmatpush.msk.msra.mxu0 %vm633_vm5, %v192_v56 }
  0xb1   : > { %480 = vmatmul.msk.f32.vlgmr.msra.gmra.mxu2 %vm313_vm12, %v287_v57  ;;  %478 = vmatmul.msk.f32.vlgmr.msra.gmra.mxu0 %vm313_vm12, %v285_v58  ;;  %v268_v59 = vpop.permute.xlu0 %267 }
  0xb2   : > { %v271_v60 = vsel %vm269_vm10, %v541_v47, %v268_v59 }
  0xb3   : > { %369 = vmatpush.msra.mxu1 %v271_v60  ;;  %512 = vmatpush.msra.mxu3 %v271_v60 }
  0xb6   : > { %v296_v1 = vpop.permute.xlu1 %295 }
  0xb9   : > { %481 = vmatmul.msk.f32.gmra.mxu2 %vm313_vm12, %v288_v61  ;;  %479 = vmatmul.msk.f32.gmra.mxu0 %vm313_vm12, %v286_v62  ;;  %v190_v63 = vpop.permute.xlu0 %189 }
  0xba   : > { %v193_v0 = vsel %vm191_vm11, %v188_v50, %v190_v63 }
  0xbb   : > { %487 = vmatpush.msk.msra.mxu1 %vm637_vm6, %v193_v0  ;;  %513 = vmatpush.msk.msra.mxu3 %vm637_vm6, %v193_v0 }
  0xbc   : > { %490 = vmatmul.msk.f32.vlgmr.msra.gmra.mxu3 %vm313_vm12, %v287_v57  ;;  %488 = vmatmul.msk.f32.vlgmr.msra.gmra.mxu1 %vm313_vm12, %v285_v58 }
  0xbe   : > { %v311_v15 = vpop.permute.xlu1 %310 }
  0xc1   : > { %v306_v5 = vpop.permute.xlu0 %305 }
  0xc4   : > { %491 = vmatmul.msk.f32.gmra.mxu3 %vm313_vm12, %v288_v61  ;;  %489 = vmatmul.msk.f32.gmra.mxu1 %vm313_vm12, %v286_v62 }
 0x12e   : > { %v343_v2 = vpop.f32.mrf.mxu0 }
 0x12f   : > { %v344_v3 = vadd.f32 %v343_v2, %v296_v1 }
 0x131   : > { %v384_v4 = vmin.f32 %v344_v3, 0.0 }
 0x133   : > { %v392_v6 = vmul.f32 0.99999976, %v384_v4 }
 0x134   : > { %v349_v7 = vpop.f32.mrf.mxu2 }
 0x135   : > { %400 = vst [vmem:[%s725_s20] sm:$0xff] %v392_v6  ;;  %v350_v9 = vadd.f32 %v349_v7, %v306_v5 }
 0x136   : > { %v346_v10 = vpop.f32.mrf.mxu0 }
 0x137   : > { %v388_v11 = vmin.f32 %v350_v9, 0.0  ;;  %v347_v12 = vadd.f32 %v346_v10, %v301_v8 }
 0x139   : > { %v396_v13 = vmul.f32 0.99999976, %v388_v11  ;;  %v386_v14 = vmin.f32 %v347_v12, 0.0  ;;  %v372_v16 = vpop.f32.mrf.mxu1 }
 0x13a   : > { %v373_v17 = vadd.f32 %v372_v16, %v296_v1 }
 0x13b   : > { %404 = vst [vmem:[%s725_s20 + $0x20] sm:$0xff] %v396_v13  ;;  %v394_v18 = vmul.f32 0.99999976, %v386_v14 }
 0x13c   : > { %v352_v19 = vpop.f32.mrf.mxu2  ;;  %v385_v21 = vmin.f32 %v373_v17, 0.0 }
 0x13d   : > { %v353_v20 = vadd.f32 %v352_v19, %v311_v15  ;;  %402 = vst [vmem:[%s725_s20 + $0x10] sm:$0xff] %v394_v18 }
 0x13e   : > { %v393_v23 = vmul.f32 0.99999976, %v385_v21 }
 0x13f   : > { %v390_v22 = vmin.f32 %v353_v20, 0.0  ;;  %v378_v24 = vpop.f32.mrf.mxu3 }
 0x140   : > { %401 = vst [vmem:[%s725_s20 + $0x8] sm:$0xff] %v393_v23  ;;  %v379_v26 = vadd.f32 %v378_v24, %v306_v5 }
 0x141   : > { %v398_v25 = vmul.f32 0.99999976, %v390_v22  ;;  %v375_v27 = vpop.f32.mrf.mxu1 }
 0x142   : > { %v389_v28 = vmin.f32 %v379_v26, 0.0  ;;  %v376_v29 = vadd.f32 %v375_v27, %v301_v8 }
 0x143   : > { %406 = vst [vmem:[%s725_s20 + $0x30] sm:$0xff] %v398_v25 }
 0x144   : > { %v397_v30 = vmul.f32 0.99999976, %v389_v28  ;;  %v387_v31 = vmin.f32 %v376_v29, 0.0 }
 0x146   : > { %405 = vst [vmem:[%s725_s20 + $0x28] sm:$0xff] %v397_v30  ;;  %v395_v32 = vmul.f32 0.99999976, %v387_v31 }
 0x147   : > { %v381_v33 = vpop.f32.mrf.mxu3 }
 0x148   : > { %403 = vst [vmem:[%s725_s20 + $0x18] sm:$0xff] %v395_v32  ;;  %v382_v34 = vadd.f32 %v381_v33, %v311_v15 }
 0x14a   : > { %v391_v35 = vmin.f32 %v382_v34, 0.0 }
 0x14c   : > { %v399_v36 = vmul.f32 0.99999976, %v391_v35 }
 0x14e   : > { %407 = vst [vmem:[%s725_s20 + $0x38] sm:$0xff] %v399_v36 }
 0x14f PF: > { %s13_s12 = sadd.s32 1, %s551_s12  }
 0x150   : > { %p10_p4 = scmp.ge.s32.totalorder %s13_s12, 4  }
 0x152   :  { %12 = sbr.rel (!%p10_p4) target bundleno = 1 (0x1), region = 62 }

</bundles_post_ra>
